<compile_context>
chip_gen: v5e
topology: v5e:2x2
jax: 0.10.0
libtpu: 0.0.40
codegen_flags: <defaults>
</compile_context>

<pallas_src>
import jax
import jax.numpy as jnp
from jax.experimental import pallas as pl
from jax.experimental.pallas import tpu as pltpu

_BN_EPS = 1e-5
_LANE = 128


def _round_up(n, m):
    return ((n + m - 1) // m) * m


def _full_spec(shape):
    # Full-array block (single grid point, grid=()).
    return pl.BlockSpec(tuple(shape), lambda *_: (0,) * len(shape))


# ----------------------------------------------------------------------------
# Fused kernel: all Residual blocks + final Linear, static layer config.
# ----------------------------------------------------------------------------
def _make_generator_kernel(batch, cfg):
    nres = cfg["nres"]
    seg_pad0 = cfg["seg_pad0"]       # padded width of x slot
    k_pads = cfg["k_pads"]           # padded input width per residual layer
    out_pads = cfg["out_pads"]       # padded output width per residual layer
    w_offs = cfg["w_offs"]           # row offset of each layer block in w_slab
    total_pad = cfg["total_pad"]     # padded width of the full concat
    out_pad_fin = cfg["out_pad_fin"]
    inv_b = 1.0 / float(batch)       # Python float -> inlined literal, no capture

    def kernel(x_ref, w_ref, v_ref, o_ref, act_ref):
        # Slot 0 of the activation slab <- (already lane-padded) input x.
        act_ref[:, 0:seg_pad0] = x_ref[...]

        for l in range(nres):
            K = k_pads[l]            # multiple of 128
            P = out_pads[l]          # multiple of 128
            R = w_offs[l]            # multiple of 128

            # One full-K MXU push per layer (concat is never materialized;
            # it *is* the prefix of the activation slab).
            z = jnp.dot(act_ref[:, :K], w_ref[R:R + K, :P],
                        preferred_element_type=jnp.float32)

            # BatchNorm1d (training stats), folded into one scale/shift.
            # Centered two-pass variance (biased, matches torch).
            mean = jnp.sum(z, axis=0, keepdims=True) * inv_b
            var = jnp.sum((z - mean) * (z - mean), axis=0, keepdims=True) * inv_b
            scale = v_ref[2 * l:2 * l + 1, :P] * jax.lax.rsqrt(var + _BN_EPS)
            shift = v_ref[2 * l + 1:2 * l + 2, :P] - mean * scale

            # ReLU + write new segment into its 128-aligned slot (slot l+1
            # starts exactly at column K). gamma/beta zero-padding keeps the
            # padded columns exactly 0.
            act_ref[:, K:K + P] = jnp.maximum(z * scale + shift, 0.0)

        # Final Linear over the whole padded concat, lane-dense output.
        Rf = w_offs[nres]
        y = jnp.dot(act_ref[:, :total_pad], w_ref[Rf:Rf + total_pad, :out_pad_fin],
                    preferred_element_type=jnp.float32)
        o_ref[...] = y + v_ref[2 * nres:2 * nres + 1, :out_pad_fin]

    return kernel


# ----------------------------------------------------------------------------
# Wrapper: single pallas_call for the whole generator.
# ----------------------------------------------------------------------------
def generator_forward(cfg, w_slab, v_slab, x):
    B, emb = x.shape
    # Lane-pad x once in the wrapper (cheap XLA pad, keeps kernel stores dense).
    x_pad = jnp.zeros((B, cfg["seg_pad0"]), jnp.float32).at[:, :emb].set(x)

    kernel = _make_generator_kernel(B, cfg)
    out = pl.pallas_call(
        kernel,
        grid=(),
        in_specs=[_full_spec(x_pad.shape),
                  _full_spec(w_slab.shape),
                  _full_spec(v_slab.shape)],
        out_specs=_full_spec((B, cfg["out_pad_fin"])),
        out_shape=jax.ShapeDtypeStruct((B, cfg["out_pad_fin"]), jnp.float32),
        scratch_shapes=[pltpu.VMEM((B, cfg["total_pad"]), jnp.float32)],
    )(x_pad, w_slab, v_slab)

    return out[:, :cfg["out_dim"]]


# ----------------------------------------------------------------------------
# Parameters: raw (for the faithful reference) + packed lane-dense slabs.
# ----------------------------------------------------------------------------
def init_generator_params(key, embedding_dim, generator_dims, output_dim):
    dims = tuple(generator_dims)
    nres = len(dims)

    # Raw per-layer params (match nn.Module shapes; bias kept for reference).
    raw = {"residuals": []}
    in_ = embedding_dim
    for out in dims:
        key, kw, kb = jax.random.split(key, 3)
        w = jax.random.normal(kw, (out, in_), jnp.float32) * 0.1   # Linear.weight
        b = jax.random.normal(kb, (out,), jnp.float32) * 0.1       # Linear.bias
        raw["residuals"].append(dict(
            w_t=w.T,                                   # (in_, out); rows = [h_{l-1},...,h_0,x]
            b=b.reshape(1, out),
            gamma=jnp.ones((1, out), jnp.float32),     # BN.weight
            beta=jnp.zeros((1, out), jnp.float32),     # BN.bias
        ))
        in_ += out
    key, kw, kb = jax.random.split(key, 3)
    wf = jax.random.normal(kw, (output_dim, in_), jnp.float32) * 0.1
    bf = jax.random.normal(kb, (output_dim,), jnp.float32) * 0.1
    raw["final"] = dict(w_t=wf.T, b=bf.reshape(1, output_dim), out_dim=output_dim)

    # --- Packed, 128-lane-padded layout ------------------------------------
    seg_real = (embedding_dim,) + dims                  # slot widths: [x, h_0, h_1, ...]
    seg_pad = tuple(_round_up(w, _LANE) for w in seg_real)
    slot_off = [0]
    for w_ in seg_pad:
        slot_off.append(slot_off[-1] + w_)
    total_pad = slot_off[-1]

    out_pads = [_round_up(d, _LANE) for d in dims]
    out_pad_fin = _round_up(output_dim, _LANE)
    slab_w = max(out_pads + [out_pad_fin])

    def place(blk, wt, l, out_cols):
        # Map raw rows (concat order [h_{l-1},...,h_0,x]) into padded slots.
        src_x = sum(dims[:l])
        blk = blk.at[0:embedding_dim, 0:out_cols].set(wt[src_x:src_x + embedding_dim, :])
        for j in range(l):
            src = sum(dims[j + 1:l])
            dst = slot_off[j + 1]
            blk = blk.at[dst:dst + dims[j], 0:out_cols].set(wt[src:src + dims[j], :])
        return blk

    w_blocks, w_offs, row = [], [], 0
    for l, p in enumerate(raw["residuals"]):
        K_pad = slot_off[l + 1]
        blk = place(jnp.zeros((K_pad, slab_w), jnp.float32), p["w_t"], l, dims[l])
        w_blocks.append(blk)
        w_offs.append(row)
        row += K_pad
    blk = place(jnp.zeros((total_pad, slab_w), jnp.float32), raw["final"]["w_t"],
                nres, output_dim)
    w_blocks.append(blk)
    w_offs.append(row)
    w_slab = jnp.concatenate(w_blocks, axis=0)

    # Vector slab: rows [gamma_0, beta_0, gamma_1, beta_1, ..., final_bias],
    # sublane-padded to a multiple of 8.  gamma padding is ZERO on purpose.
    nrows = _round_up(2 * nres + 1, 8)
    v_slab = jnp.zeros((nrows, slab_w), jnp.float32)
    for l, p in enumerate(raw["residuals"]):
        v_slab = v_slab.at[2 * l, :dims[l]].set(p["gamma"][0])
        v_slab = v_slab.at[2 * l + 1, :dims[l]].set(p["beta"][0])
    v_slab = v_slab.at[2 * nres, :output_dim].set(bf)

    cfg = dict(
        nres=nres,
        seg_pad0=seg_pad[0],
        k_pads=[slot_off[l + 1] for l in range(nres)],
        out_pads=out_pads,
        w_offs=w_offs,
        total_pad=total_pad,
        out_pad_fin=out_pad_fin,
        out_dim=output_dim,
    )
    return raw, cfg, w_slab, v_slab


# Pure-JAX reference (faithful to the PyTorch module, f32, bias included).
def generator_reference(raw, x):
    h = x
    for p in raw["residuals"]:
        z = h @ p["w_t"] + p["b"]
        mean = jnp.mean(z, axis=0, keepdims=True)
        var = jnp.mean((z - mean) ** 2, axis=0, keepdims=True)
        zn = (z - mean) / jnp.sqrt(var + _BN_EPS) * p["gamma"] + p["beta"]
        h = jnp.concatenate([jnp.maximum(zn, 0.0), h], axis=1)
    y = h @ raw["final"]["w_t"] + raw["final"]["b"]
    return y[:, :raw["final"]["out_dim"]]


if __name__ == "__main__":
    batch = 8
    embedding_dim = 32
    generator_dims = (32, 64)
    output_dim = 16

    key = jax.random.PRNGKey(0)
    key, kx = jax.random.split(key)
    x = jax.random.normal(kx, (batch, embedding_dim), jnp.float32)

    raw, cfg, w_slab, v_slab = init_generator_params(
        key, embedding_dim, generator_dims, output_dim)

    out = generator_forward(cfg, w_slab, v_slab, x)
    out = jax.block_until_ready(out)

    ref = generator_reference(raw, x)
    assert out.shape == (batch, output_dim)
    assert jnp.allclose(out, ref, atol=1e-4, rtol=1e-4), (
        float(jnp.max(jnp.abs(out - ref))))

    print("KERNEL_OK")
</pallas_src>

<mosaic_0001>
module attributes {stable_mosaic.version = 11 : i64} {
  func.func @kernel(%arg0: memref<8x128xf32, #tpu.memory_space<vmem>>, %arg1: memref<768x128xf32, #tpu.memory_space<vmem>>, %arg2: memref<8x128xf32, #tpu.memory_space<vmem>>, %arg3: memref<8x128xf32, #tpu.memory_space<vmem>>, %arg4: memref<8x384xf32, #tpu.memory_space<vmem>>) attributes {dimension_semantics = [], scalar_prefetch = 0 : i64, scratch_operands = 1 : i64, tpu.core_type = #tpu.core_type<tc>} {
    %c0 = arith.constant 0 : index
    %c0_0 = arith.constant 0 : index
    %0 = vector.load %arg0[%c0, %c0_0] : memref<8x128xf32, #tpu.memory_space<vmem>>, vector<8x128xf32>
    %c0_1 = arith.constant 0 : index
    %c0_2 = arith.constant 0 : index
    %1 = vector.load %arg4[%c0_1, %c0_2] : memref<8x384xf32, #tpu.memory_space<vmem>>, vector<8x128xf32>
    tpu.vector_store %arg4[%c0_1, %c0_2], %0 {strides = array<i32>} : memref<8x384xf32, #tpu.memory_space<vmem>>, vector<8x128xf32>,
    %c0_3 = arith.constant 0 : index
    %c0_4 = arith.constant 0 : index
    %2 = vector.load %arg4[%c0_3, %c0_4] : memref<8x384xf32, #tpu.memory_space<vmem>>, vector<8x128xf32>
    %c0_5 = arith.constant 0 : index
    %c0_6 = arith.constant 0 : index
    %3 = vector.load %arg1[%c0_5, %c0_6] : memref<768x128xf32, #tpu.memory_space<vmem>>, vector<128x128xf32>
    %cst = arith.constant dense<0.000000e+00> : vector<8x128xf32>
    %4 = tpu.matmul %2, %3, %cst {dimension_numbers = #tpu.dot_dimension_numbers<[1], [0], [0], [1], [0, 0, 1, 1], [], []>} : vector<8x128xf32>, vector<128x128xf32>, vector<8x128xf32> -> vector<8x128xf32>
    %cst_7 = arith.constant dense<0.000000e+00> : vector<128xf32>
    %5 = vector.multi_reduction <add>, %4, %cst_7 [0] : vector<8x128xf32> to vector<128xf32>
    %6 = vector.shape_cast %5 : vector<128xf32> to vector<1x128xf32>
    %cst_8 = arith.constant 1.250000e-01 : f32
    %7 = vector.broadcast %cst_8 : f32 to vector<1x128xf32>
    %8 = arith.mulf %6, %7 : vector<1x128xf32>
    %9 = vector.broadcast %8 : vector<1x128xf32> to vector<8x128xf32>
    %10 = arith.subf %4, %9 : vector<8x128xf32>
    %11 = vector.broadcast %8 : vector<1x128xf32> to vector<8x128xf32>
    %12 = arith.subf %4, %11 : vector<8x128xf32>
    %13 = arith.mulf %10, %12 : vector<8x128xf32>
    %cst_9 = arith.constant dense<0.000000e+00> : vector<128xf32>
    %14 = vector.multi_reduction <add>, %13, %cst_9 [0] : vector<8x128xf32> to vector<128xf32>
    %15 = vector.shape_cast %14 : vector<128xf32> to vector<1x128xf32>
    %cst_10 = arith.constant 1.250000e-01 : f32
    %16 = vector.broadcast %cst_10 : f32 to vector<1x128xf32>
    %17 = arith.mulf %15, %16 : vector<1x128xf32>
    %c0_11 = arith.constant 0 : index
    %c0_12 = arith.constant 0 : index
    %18 = vector.load %arg2[%c0_11, %c0_12] : memref<8x128xf32, #tpu.memory_space<vmem>>, vector<1x128xf32>
    %cst_13 = arith.constant 9.99999974E-6 : f32
    %19 = vector.broadcast %cst_13 : f32 to vector<1x128xf32>
    %20 = arith.addf %17, %19 : vector<1x128xf32>
    %21 = math.rsqrt %20 : vector<1x128xf32>
    %22 = arith.mulf %18, %21 : vector<1x128xf32>
    %c1 = arith.constant 1 : index
    %c0_14 = arith.constant 0 : index
    %23 = vector.load %arg2[%c1, %c0_14] : memref<8x128xf32, #tpu.memory_space<vmem>>, vector<1x128xf32>
    %24 = arith.mulf %8, %22 : vector<1x128xf32>
    %25 = arith.subf %23, %24 : vector<1x128xf32>
    %26 = vector.broadcast %22 : vector<1x128xf32> to vector<8x128xf32>
    %27 = arith.mulf %4, %26 : vector<8x128xf32>
    %28 = vector.broadcast %25 : vector<1x128xf32> to vector<8x128xf32>
    %29 = arith.addf %27, %28 : vector<8x128xf32>
    %cst_15 = arith.constant 0.000000e+00 : f32
    %30 = vector.broadcast %cst_15 : f32 to vector<8x128xf32>
    %31 = arith.maximumf %29, %30 : vector<8x128xf32>
    %c0_16 = arith.constant 0 : index
    %c128 = arith.constant 128 : index
    %32 = vector.load %arg4[%c0_16, %c128] : memref<8x384xf32, #tpu.memory_space<vmem>>, vector<8x128xf32>
    tpu.vector_store %arg4[%c0_16, %c128], %31 {strides = array<i32>} : memref<8x384xf32, #tpu.memory_space<vmem>>, vector<8x128xf32>,
    %c0_17 = arith.constant 0 : index
    %c0_18 = arith.constant 0 : index
    %33 = vector.load %arg4[%c0_17, %c0_18] : memref<8x384xf32, #tpu.memory_space<vmem>>, vector<8x256xf32>
    %c128_19 = arith.constant 128 : index
    %c0_20 = arith.constant 0 : index
    %34 = vector.load %arg1[%c128_19, %c0_20] : memref<768x128xf32, #tpu.memory_space<vmem>>, vector<256x128xf32>
    %cst_21 = arith.constant dense<0.000000e+00> : vector<8x128xf32>
    %35 = tpu.matmul %33, %34, %cst_21 {dimension_numbers = #tpu.dot_dimension_numbers<[1], [0], [0], [1], [0, 0, 1, 1], [], []>} : vector<8x256xf32>, vector<256x128xf32>, vector<8x128xf32> -> vector<8x128xf32>
    %cst_22 = arith.constant dense<0.000000e+00> : vector<128xf32>
    %36 = vector.multi_reduction <add>, %35, %cst_22 [0] : vector<8x128xf32> to vector<128xf32>
    %37 = vector.shape_cast %36 : vector<128xf32> to vector<1x128xf32>
    %cst_23 = arith.constant 1.250000e-01 : f32
    %38 = vector.broadcast %cst_23 : f32 to vector<1x128xf32>
    %39 = arith.mulf %37, %38 : vector<1x128xf32>
    %40 = vector.broadcast %39 : vector<1x128xf32> to vector<8x128xf32>
    %41 = arith.subf %35, %40 : vector<8x128xf32>
    %42 = vector.broadcast %39 : vector<1x128xf32> to vector<8x128xf32>
    %43 = arith.subf %35, %42 : vector<8x128xf32>
    %44 = arith.mulf %41, %43 : vector<8x128xf32>
    %cst_24 = arith.constant dense<0.000000e+00> : vector<128xf32>
    %45 = vector.multi_reduction <add>, %44, %cst_24 [0] : vector<8x128xf32> to vector<128xf32>
    %46 = vector.shape_cast %45 : vector<128xf32> to vector<1x128xf32>
    %cst_25 = arith.constant 1.250000e-01 : f32
    %47 = vector.broadcast %cst_25 : f32 to vector<1x128xf32>
    %48 = arith.mulf %46, %47 : vector<1x128xf32>
    %c2 = arith.constant 2 : index
    %c0_26 = arith.constant 0 : index
    %49 = vector.load %arg2[%c2, %c0_26] : memref<8x128xf32, #tpu.memory_space<vmem>>, vector<1x128xf32>
    %cst_27 = arith.constant 9.99999974E-6 : f32
    %50 = vector.broadcast %cst_27 : f32 to vector<1x128xf32>
    %51 = arith.addf %48, %50 : vector<1x128xf32>
    %52 = math.rsqrt %51 : vector<1x128xf32>
    %53 = arith.mulf %49, %52 : vector<1x128xf32>
    %c3 = arith.constant 3 : index
    %c0_28 = arith.constant 0 : index
    %54 = vector.load %arg2[%c3, %c0_28] : memref<8x128xf32, #tpu.memory_space<vmem>>, vector<1x128xf32>
    %55 = arith.mulf %39, %53 : vector<1x128xf32>
    %56 = arith.subf %54, %55 : vector<1x128xf32>
    %57 = vector.broadcast %53 : vector<1x128xf32> to vector<8x128xf32>
    %58 = arith.mulf %35, %57 : vector<8x128xf32>
    %59 = vector.broadcast %56 : vector<1x128xf32> to vector<8x128xf32>
    %60 = arith.addf %58, %59 : vector<8x128xf32>
    %cst_29 = arith.constant 0.000000e+00 : f32
    %61 = vector.broadcast %cst_29 : f32 to vector<8x128xf32>
    %62 = arith.maximumf %60, %61 : vector<8x128xf32>
    %c0_30 = arith.constant 0 : index
    %c256 = arith.constant 256 : index
    %63 = vector.load %arg4[%c0_30, %c256] : memref<8x384xf32, #tpu.memory_space<vmem>>, vector<8x128xf32>
    tpu.vector_store %arg4[%c0_30, %c256], %62 {strides = array<i32>} : memref<8x384xf32, #tpu.memory_space<vmem>>, vector<8x128xf32>,
    %c0_31 = arith.constant 0 : index
    %c0_32 = arith.constant 0 : index
    %64 = vector.load %arg4[%c0_31, %c0_32] : memref<8x384xf32, #tpu.memory_space<vmem>>, vector<8x384xf32>
    %c384 = arith.constant 384 : index
    %c0_33 = arith.constant 0 : index
    %65 = vector.load %arg1[%c384, %c0_33] : memref<768x128xf32, #tpu.memory_space<vmem>>, vector<384x128xf32>
    %cst_34 = arith.constant dense<0.000000e+00> : vector<8x128xf32>
    %66 = tpu.matmul %64, %65, %cst_34 {dimension_numbers = #tpu.dot_dimension_numbers<[1], [0], [0], [1], [0, 0, 1, 1], [], []>} : vector<8x384xf32>, vector<384x128xf32>, vector<8x128xf32> -> vector<8x128xf32>
    %c4 = arith.constant 4 : index
    %c0_35 = arith.constant 0 : index
    %67 = vector.load %arg2[%c4, %c0_35] : memref<8x128xf32, #tpu.memory_space<vmem>>, vector<1x128xf32>
    %68 = vector.broadcast %67 : vector<1x128xf32> to vector<8x128xf32>
    %69 = arith.addf %66, %68 : vector<8x128xf32>
    %c0_36 = arith.constant 0 : index
    %c0_37 = arith.constant 0 : index
    %70 = vector.load %arg3[%c0_36, %c0_37] : memref<8x128xf32, #tpu.memory_space<vmem>>, vector<8x128xf32>
    tpu.vector_store %arg3[%c0_36, %c0_37], %69 {strides = array<i32>} : memref<8x128xf32, #tpu.memory_space<vmem>>, vector<8x128xf32>,
    return
  }
}

</mosaic_0001>

<bundles_post_ra>
// kernel: tpu_custom_call.1
= control target key start
LH: loop header
LB: loop body
LE: loop exit
PB: predicated region body
PF: predicated region fallthrough
CT: control target
= control target key end

     0   :  { %8 = vsyncpa [#allocation4], 0  ;;  %s551_s0 = inlined_call_operand.hbm [shape: f32[8,128], index: 0, kind: input, shape index: {}]   ;;  %s552_s1 = inlined_call_operand.hbm [shape: f32[768,128], index: 1, kind: input, shape index: {}]   ;;  %s553_s2 = inlined_call_operand.hbm [shape: f32[8,128], index: 2, kind: input, shape index: {}]   ;;  %s554_s3 = inlined_call_operand.hbm [shape: f32[8,128], index: 3, kind: output, shape index: {}]  }
   0x1   :  { %9 = vsyncpa [#allocation7], 0  ;;  %s26_s14 = sshll.u32 %s552_s1, 4  ;;  %s27_s14 = int_to_ptr.hbm [resolvable:$true] %s26_s14 }
   0x2   :  { %10 = vsyncpa [#allocation5], 0  ;;  %s492_s15 = smov [#allocation6]   ;;  %s16_s19 = sshll.u32 %s551_s0, 4  ;;  %s17_s19 = int_to_ptr.hbm [resolvable:$true] %s16_s19 }
   0x3   :  { %s28_s16 = sshll.u32 %s492_s15, 4  ;;  %s493_s20 = smov 128   ;;  %s29_s16 = int_to_ptr.vmem [resolvable:$true] %s28_s16 }
   0x4   :  { %s494_s21 = smov 8   ;;  %s495_s22 = smov [#allocation3]  }
   0x5   :  { %34 = dma.hbm_to_vmem [thread:$0]  %s27_s14, 12288, %s29_s16, [#allocation7], %s493_s20, %s493_s20, %s494_s21  }
   0x6   :  { %s18_s23 = sshll.u32 %s495_s22, 4  ;;  %s40_s26 = sshll.u32 %s553_s2, 4  ;;  %s19_s23 = int_to_ptr.vmem [resolvable:$true] %s18_s23  ;;  %s41_s26 = int_to_ptr.hbm [resolvable:$true] %s40_s26 }
   0x7   :  { %21 = dma.hbm_to_vmem [thread:$0]  %s17_s19, 128, %s19_s23, [#allocation4]  }
   0x8   :  { %s496_s1 = smov [#allocation8]  }
   0x9   :  { %s42_s27 = sshll.u32 %s496_s1, 4  ;;  %s43_s27 = int_to_ptr.vmem [resolvable:$true] %s42_s27 }
   0xa   :  { %45 = dma.hbm_to_vmem [thread:$0]  %s41_s26, 128, %s43_s27, [#allocation7]  }
   0xb   :  { %486 = dma.done.wait [#allocation4], 128  }
   0xc   :  { %487 = vsyncadd [#allocation4], 4294967168 }
   0xd   :  { %488 = dma.done.wait [#allocation7], 12416  }
   0xe   :  { %489 = vsyncadd [#allocation7], 4294954880  ;;  %v76_v0 = vld [vmem:[#allocation6 + $0x78] sm:$0xff]  ;;  %v75_v1 = vld [vmem:[#allocation6 + $0x70] sm:$0xff]  ;;  %s497_s0 = smov [#allocation9]   ;;  %s368_s30 = sshll.u32 %s554_s3, 4  ;;  %s369_s30 = int_to_ptr.hbm [resolvable:$true] %s368_s30 }
   0xf   :  { %77 = vmatpush.msra.mxu0 %v76_v0  ;;  %v74_v2 = vld [vmem:[#allocation6 + $0x68] sm:$0xff]  ;;  %v73_v3 = vld [vmem:[#allocation6 + $0x60] sm:$0xff]  ;;  %v72_v4 = vld [vmem:[#allocation6 + $0x58] sm:$0xff]  ;;  %s366_s2 = sshll.u32 %s497_s0, 4  ;;  %s367_s2 = int_to_ptr.vmem [resolvable:$true] %s366_s2 }
  0x10   :  { %v71_v5 = vld [vmem:[#allocation6 + $0x50] sm:$0xff]  ;;  %v70_v6 = vld [vmem:[#allocation6 + $0x48] sm:$0xff]  ;;  %v69_v7 = vld [vmem:[#allocation6 + $0x40] sm:$0xff] }
  0x11   :  { %78 = vmatpush.msra.mxu0 %v75_v1  ;;  %v68_v8 = vld [vmem:[#allocation6 + $0x38] sm:$0xff]  ;;  %v67_v9 = vld [vmem:[#allocation6 + $0x30] sm:$0xff]  ;;  %v66_v10 = vld [vmem:[#allocation6 + $0x28] sm:$0xff] }
  0x12   :  { %v65_v11 = vld [vmem:[#allocation6 + $0x20] sm:$0xff]  ;;  %v64_v12 = vld [vmem:[#allocation6 + $0x18] sm:$0xff]  ;;  %v63_v13 = vld [vmem:[#allocation6 + $0x10] sm:$0xff] }
  0x13   :  { %79 = vmatpush.msra.mxu0 %v74_v2  ;;  %v62_v14 = vld [vmem:[#allocation6 + $0x8] sm:$0xff]  ;;  %v61_v15 = vld [vmem:[#allocation6] sm:$0xff]  ;;  %v527_v16 = vld [vmem:[#allocation3] sm:$0xff] }
  0x14   :  { %v265_v17 = vld [vmem:[#allocation6 + $0x1f8] sm:$0xff]  ;;  %v264_v18 = vld [vmem:[#allocation6 + $0x1f0] sm:$0xff]  ;;  %v263_v19 = vld [vmem:[#allocation6 + $0x1e8] sm:$0xff] }
  0x15   :  { %80 = vmatpush.msra.mxu0 %v73_v3  ;;  %300 = vmatpush.msra.mxu3 %v265_v17  ;;  %v262_v20 = vld [vmem:[#allocation6 + $0x1e0] sm:$0xff]  ;;  %v168_v23 = vld [vmem:[#allocation6 + $0x178] sm:$0xff]  ;;  %v167_v27 = vld [vmem:[#allocation6 + $0x170] sm:$0xff] }
  0x16   :  { %v261_v24 = vld [vmem:[#allocation6 + $0x1d8] sm:$0xff]  ;;  %189 = vmatpush.msra.mxu2 %v168_v23  ;;  %v260_v28 = vld [vmem:[#allocation6 + $0x1d0] sm:$0xff]  ;;  %v166_v31 = vld [vmem:[#allocation6 + $0x168] sm:$0xff] }
  0x17   :  { %81 = vmatpush.msra.mxu0 %v72_v4  ;;  %301 = vmatpush.msra.mxu3 %v264_v18  ;;  %v281_v25 = vld [vmem:[#allocation6 + $0x278] sm:$0xff]  ;;  %v280_v29 = vld [vmem:[#allocation6 + $0x270] sm:$0xff]  ;;  %v259_v32 = vld [vmem:[#allocation6 + $0x1c8] sm:$0xff] }
  0x18   :  { %190 = vmatpush.msra.mxu2 %v167_v27  ;;  %v279_v33 = vld [vmem:[#allocation6 + $0x268] sm:$0xff]  ;;  %v152_v35 = vld [vmem:[#allocation6 + $0xf8] sm:$0xff]  ;;  %v165_v36 = vld [vmem:[#allocation6 + $0x160] sm:$0xff] }
  0x19   :  { %82 = vmatpush.msra.mxu0 %v71_v5  ;;  %302 = vmatpush.msra.mxu3 %v263_v19  ;;  %v258_v37 = vld [vmem:[#allocation6 + $0x1c0] sm:$0xff]  ;;  %v151_v40 = vld [vmem:[#allocation6 + $0xf0] sm:$0xff]  ;;  %v164_v41 = vld [vmem:[#allocation6 + $0x158] sm:$0xff] }
  0x1a   :  { %191 = vmatpush.msra.mxu2 %v166_v31  ;;  %169 = vmatpush.msra.mxu1 %v152_v35  ;;  %v278_v38 = vld [vmem:[#allocation6 + $0x260] sm:$0xff]  ;;  %v257_v42 = vld [vmem:[#allocation6 + $0x1b8] sm:$0xff]  ;;  %v150_v44 = vld [vmem:[#allocation6 + $0xe8] sm:$0xff] }
  0x1b   :  { %83 = vmatpush.msra.mxu0 %v70_v6  ;;  %303 = vmatpush.msra.mxu3 %v262_v20  ;;  %v277_v43 = vld [vmem:[#allocation6 + $0x258] sm:$0xff]  ;;  %v163_v45 = vld [vmem:[#allocation6 + $0x150] sm:$0xff]  ;;  %v149_v49 = vld [vmem:[#allocation6 + $0xe0] sm:$0xff] }
  0x1c   :  { %192 = vmatpush.msra.mxu2 %v165_v36  ;;  %170 = vmatpush.msra.mxu1 %v151_v40  ;;  %v256_v47 = vld [vmem:[#allocation6 + $0x1b0] sm:$0xff]  ;;  %v162_v50 = vld [vmem:[#allocation6 + $0x148] sm:$0xff]  ;;  %v148_v54 = vld [vmem:[#allocation6 + $0xd8] sm:$0xff] }
  0x1d   :  { %84 = vmatpush.msra.mxu0 %v69_v7  ;;  %304 = vmatpush.msra.mxu3 %v261_v24  ;;  %v276_v48 = vld [vmem:[#allocation6 + $0x250] sm:$0xff]  ;;  %v255_v51 = vld [vmem:[#allocation6 + $0x1a8] sm:$0xff]  ;;  %v161_v55 = vld [vmem:[#allocation6 + $0x140] sm:$0xff] }
  0x1e   :  { %193 = vmatpush.msra.mxu2 %v164_v41  ;;  %171 = vmatpush.msra.mxu1 %v150_v44  ;;  %v275_v52 = vld [vmem:[#allocation6 + $0x248] sm:$0xff]  ;;  %v254_v56 = vld [vmem:[#allocation6 + $0x1a0] sm:$0xff]  ;;  %v147_v59 = vld [vmem:[#allocation6 + $0xd0] sm:$0xff] }
  0x1f   :  { %85 = vmatpush.msra.mxu0 %v68_v8  ;;  %305 = vmatpush.msra.mxu3 %v260_v28  ;;  %v274_v57 = vld [vmem:[#allocation6 + $0x240] sm:$0xff]  ;;  %v160_v60 = vld [vmem:[#allocation6 + $0x138] sm:$0xff]  ;;  %v146_v0 = vld [vmem:[#allocation6 + $0xc8] sm:$0xff] }
  0x20   :  { %194 = vmatpush.msra.mxu2 %v163_v45  ;;  %172 = vmatpush.msra.mxu1 %v149_v49  ;;  %v253_v61 = vld [vmem:[#allocation6 + $0x198] sm:$0xff]  ;;  %v159_v1 = vld [vmem:[#allocation6 + $0x130] sm:$0xff]  ;;  %v145_v5 = vld [vmem:[#allocation6 + $0xc0] sm:$0xff] }
  0x21   :  { %86 = vmatpush.msra.mxu0 %v67_v9  ;;  %306 = vmatpush.msra.mxu3 %v259_v32  ;;  %v273_v62 = vld [vmem:[#allocation6 + $0x238] sm:$0xff]  ;;  %v252_v2 = vld [vmem:[#allocation6 + $0x190] sm:$0xff]  ;;  %v158_v6 = vld [vmem:[#allocation6 + $0x128] sm:$0xff] }
  0x22   :  { %195 = vmatpush.msra.mxu2 %v162_v50  ;;  %173 = vmatpush.msra.mxu1 %v148_v54  ;;  %v272_v3 = vld [vmem:[#allocation6 + $0x230] sm:$0xff]  ;;  %v251_v7 = vld [vmem:[#allocation6 + $0x188] sm:$0xff]  ;;  %v156_v17 = vld [vmem:[#allocation6 + $0x118] sm:$0xff] }
  0x23   :  { %87 = vmatpush.msra.mxu0 %v66_v10  ;;  %307 = vmatpush.msra.mxu3 %v258_v37  ;;  %v271_v8 = vld [vmem:[#allocation6 + $0x228] sm:$0xff]  ;;  %v144_v10 = vld [vmem:[#allocation6 + $0xb8] sm:$0xff]  ;;  %v268_v23 = vld [vmem:[#allocation6 + $0x210] sm:$0xff] }
  0x24   :  { %196 = vmatpush.msra.mxu2 %v161_v55  ;;  %174 = vmatpush.msra.mxu1 %v147_v59  ;;  %v269_v18 = vld [vmem:[#allocation6 + $0x218] sm:$0xff]  ;;  %v142_v20 = vld [vmem:[#allocation6 + $0xa8] sm:$0xff]  ;;  %v266_v31 = vld [vmem:[#allocation6 + $0x200] sm:$0xff] }
  0x25   :  { %88 = vmatpush.msra.mxu0 %v65_v11  ;;  %308 = vmatpush.msra.mxu3 %v257_v42  ;;  %v157_v11 = vld [vmem:[#allocation6 + $0x120] sm:$0xff]  ;;  %v267_v27 = vld [vmem:[#allocation6 + $0x208] sm:$0xff] }
  0x26   :  { %197 = vmatpush.msra.mxu2 %v160_v60  ;;  %175 = vmatpush.msra.mxu1 %v146_v0  ;;  %v138_v35 = vld [vmem:[#allocation6 + $0x88] sm:$0xff]  ;;  %v137_v36 = vld [vmem:[#allocation6 + $0x80] sm:$0xff]  ;;  %v293_v0 = vld [vmem:[#allocation6 + $0x2d8] sm:$0xff] }
  0x27   :  { %89 = vmatpush.msra.mxu0 %v64_v12  ;;  %309 = vmatpush.msra.mxu3 %v256_v47  ;;  %v250_v12 = vld [vmem:[#allocation6 + $0x180] sm:$0xff] }
  0x28   :  { %198 = vmatpush.msra.mxu2 %v159_v1  ;;  %176 = vmatpush.msra.mxu1 %v145_v5  ;;  %v113_v42 = vld [vmem:[#allocation8] sm:$0x1]  ;;  %v292_v1 = vld [vmem:[#allocation6 + $0x2d0] sm:$0xff] }
  0x29   :  { %90 = vmatpush.msra.mxu0 %v63_v13  ;;  %310 = vmatpush.msra.mxu3 %v255_v51  ;;  %v270_v13 = vld [vmem:[#allocation6 + $0x220] sm:$0xff] }
  0x2a   :  { %199 = vmatpush.msra.mxu2 %v158_v6  ;;  %177 = vmatpush.msra.mxu1 %v144_v10  ;;  %v290_v5 = vld [vmem:[#allocation6 + $0x2c0] sm:$0xff] }
  0x2b   :  { %91 = vmatpush.msra.mxu0 %v62_v14  ;;  %311 = vmatpush.msra.mxu3 %v254_v56 }
  0x2c   :  { %200 = vmatpush.msra.mxu2 %v157_v11  ;;  %v287_v11 = vld [vmem:[#allocation6 + $0x2a8] sm:$0xff] }
  0x2d   :  { %92 = vmatpush.msra.mxu0 %v61_v15  ;;  %312 = vmatpush.msra.mxu3 %v253_v61  ;;  %v143_v15 = vld [vmem:[#allocation6 + $0xb0] sm:$0xff]  ;;  %v295_v61 = vld [vmem:[#allocation6 + $0x2e8] sm:$0xff] }
  0x2e   :  { %93 = vmatmul.f32.vlgmr.msra.gmra.mxu0 %v527_v16  ;;  %178 = vmatpush.msra.mxu1 %v143_v15  ;;  %v285_v15 = vld [vmem:[#allocation6 + $0x298] sm:$0xff] }
  0x2f   :  { %320 = vmatpush.msrb.mxu0 %v281_v25  ;;  %313 = vmatpush.msra.mxu3 %v252_v2  ;;  %v141_v25 = vld [vmem:[#allocation6 + $0xa0] sm:$0xff] }
  0x30   :  { %201 = vmatpush.msra.mxu2 %v156_v17  ;;  %179 = vmatpush.msra.mxu1 %v142_v20  ;;  %v283_v20 = vld [vmem:[#allocation6 + $0x288] sm:$0xff] }
  0x31   :  { %321 = vmatpush.msrb.mxu0 %v280_v29  ;;  %314 = vmatpush.msra.mxu3 %v251_v7  ;;  %v140_v29 = vld [vmem:[#allocation6 + $0x98] sm:$0xff] }
  0x32   :  { %180 = vmatpush.msra.mxu1 %v141_v25  ;;  %v289_v7 = vld [vmem:[#allocation6 + $0x2b8] sm:$0xff] }
  0x33   :  { %322 = vmatpush.msrb.mxu0 %v279_v33  ;;  %315 = vmatpush.msra.mxu3 %v250_v12 }
  0x34   :  { %316 = vmatmul.f32.vlgmr.msra.gmra.mxu3 %v527_v16  ;;  %181 = vmatpush.msra.mxu1 %v140_v29 }
  0x35   :  { %323 = vmatpush.msrb.mxu0 %v278_v38 }
  0x37   :  { %324 = vmatpush.msrb.mxu0 %v277_v43 }
  0x39   :  { %325 = vmatpush.msrb.mxu0 %v276_v48 }
  0x3b   :  { %326 = vmatpush.msrb.mxu0 %v275_v52 }
  0x3d   :  { %327 = vmatpush.msrb.mxu0 %v274_v57 }
  0x3f   :  { %328 = vmatpush.msrb.mxu0 %v273_v62  ;;  %v294_v62 = vld [vmem:[#allocation6 + $0x2e0] sm:$0xff] }
  0x41   :  { %329 = vmatpush.msrb.mxu0 %v272_v3  ;;  %v291_v3 = vld [vmem:[#allocation6 + $0x2c8] sm:$0xff] }
  0x43   :  { %330 = vmatpush.msrb.mxu0 %v271_v8 }
  0x45   :  { %331 = vmatpush.msrb.mxu0 %v270_v13  ;;  %v286_v13 = vld [vmem:[#allocation6 + $0x2a0] sm:$0xff] }
  0x47   :  { %332 = vmatpush.msrb.mxu0 %v269_v18  ;;  %v284_v18 = vld [vmem:[#allocation6 + $0x290] sm:$0xff] }
  0x49   :  { %333 = vmatpush.msrb.mxu0 %v268_v23  ;;  %v282_v23 = vld [vmem:[#allocation6 + $0x280] sm:$0xff] }
  0x4b   :  { %334 = vmatpush.msrb.mxu0 %v267_v27 }
  0x4d   :  { %335 = vmatpush.msrb.mxu0 %v266_v31  ;;  %v225_v31 = vld [vmem:[#allocation8 + $0x2] sm:$0x1] }
  0xab   :  { %v530_v21 = vpop.f32.mrf.mxu0 }
  0xac   :  { %v97_v22 = vrot.slane %v530_v21, 4 }
  0xae   :  { %v98_v26 = vadd.f32 %v97_v22, %v530_v21  ;;  %v155_v22 = vld [vmem:[#allocation6 + $0x110] sm:$0xff] }
  0xaf   :  { %202 = vmatpush.msra.mxu2 %v155_v22 }
  0xb0   :  { %v99_v30 = vrot.slane %v98_v26, 2 }
  0xb2   :  { %v100_v34 = vadd.f32 %v99_v30, %v98_v26  ;;  %v154_v26 = vld [vmem:[#allocation6 + $0x108] sm:$0xff]  ;;  %v153_v30 = vld [vmem:[#allocation6 + $0x100] sm:$0xff] }
  0xb3   :  { %203 = vmatpush.msra.mxu2 %v154_v26 }
  0xb4   :  { %v101_v39 = vrot.slane %v100_v34, 1 }
  0xb5   :  { %204 = vmatpush.msra.mxu2 %v153_v30 }
  0xb6   :  { %v102_v46 = vadd.f32 %v101_v39, %v100_v34  ;;  %v139_v34 = vld [vmem:[#allocation6 + $0x90] sm:$0xff] }
  0xb7   :  { %182 = vmatpush.msra.mxu1 %v139_v34 }
  0xb8   :  { %v534_v53 = vmul.f32 0.125, %v102_v46  ;;  %v126_v46 = vld [vmem:[#allocation8 + $0x1] sm:$0x1] }
  0xb9   :  { %183 = vmatpush.msra.mxu1 %v138_v35  ;;  %v238_v35 = vld [vmem:[#allocation8 + $0x3] sm:$0x1] }
  0xba   :  { %v104_v58 = vsub.f32 %v530_v21, %v534_v53 }
  0xbb   :  { %184 = vmatpush.msra.mxu1 %v137_v36 }
  0xbc   :  { %v105_v63 = vmul.f32 %v104_v58, %v104_v58  ;;  %185 = vmatmul.f32.vlgmr.msra.gmra.mxu1 %v527_v16  ;;  %v297_v58 = vld [vmem:[#allocation6 + $0x2f8] sm:$0xff] }
  0xbd   :  { %340 = vmatpush.msrb.mxu1 %v297_v58 }
  0xbe   :  { %v106_v4 = vrot.slane %v105_v63, 4 }
  0xc0   :  { %v107_v9 = vadd.f32 %v106_v4, %v105_v63 }
  0xc2   :  { %v108_v14 = vrot.slane %v107_v9, 2 }
  0xc4   :  { %v109_v19 = vadd.f32 %v108_v14, %v107_v9  ;;  %v288_v9 = vld [vmem:[#allocation6 + $0x2b0] sm:$0xff] }
  0xc6   :  { %v110_v24 = vrot.slane %v109_v19, 1 }
  0xc8   :  { %v111_v28 = vadd.f32 %v110_v24, %v109_v19 }
  0xca   :  { %v112_v32 = vmul.f32 0.125, %v111_v28 }
  0xcc   :  { %v114_v33 = vadd.f32 1e-05, %v112_v32 }
  0xce   :  { %386 = vrsqrt.f32 %v114_v33  ;;  %vm121_vm1 = vweird.f32 %v114_v33 }
  0xd4   :  { %v387_v37 = vpop.eup %386 }
  0xd5   :  { %v116_v38 = vmul.f32 %v387_v37, %v114_v33  ;;  %vm122_vm0 = vweird.f32 %v387_v37 }
  0xd6   :  { %vm123_vm2 = vmor %vm121_vm1, %vm122_vm0 }
  0xd7   :  { %v117_v39 = vmul.f32 %v387_v37, %v116_v38 }
  0xd9   :  { %v118_v40 = vmul.f32 0.5, %v117_v39 }
  0xdb   :  { %v119_v41 = vsub.f32 1.5, %v118_v40 }
  0xdd   :  { %v120_v43 = vmul.f32 %v387_v37, %v119_v41 }
  0xdf   :  { %v124_v44 = vsel %vm123_vm2, %v387_v37, %v120_v43  ;;  %v385_v43 = vld [vmem:[#allocation8 + $0x4] ss:$0 sm:$0xff] }
  0xe0   :  { %v125_v45 = vmul.f32 %v124_v44, %v113_v42  ;;  %v317_v44 = vpop.f32.mrf.mxu3 }
  0xe2   :  { %v127_v47 = vmul.f32 %v125_v45, %v534_v53  ;;  %v129_v48 = vperm.slane %v125_v45, 0  ;;  %v296_v53 = vld [vmem:[#allocation6 + $0x2f0] sm:$0xff]  ;;  %v318_v45 = vadd.f32 %v385_v43, %v317_v44 }
  0xe3   :  { %341 = vmatpush.msrb.mxu1 %v296_v53 }
  0xe4   :  { %v128_v49 = vsub.f32 %v126_v46, %v127_v47  ;;  %v130_v50 = vmul.f32 %v129_v48, %v530_v21 }
  0xe5   :  { %342 = vmatpush.msrb.mxu1 %v295_v61 }
  0xe6   :  { %v131_v16 = vperm.slane %v128_v49, 0 }
  0xe7   :  { %343 = vmatpush.msrb.mxu1 %v294_v62 }
  0xe8   :  { %v132_v51 = vadd.f32 %v131_v16, %v130_v50 }
  0xe9   :  { %344 = vmatpush.msrb.mxu1 %v293_v0 }
  0xea   :  { %v133_v52 = vmax.f32 %v132_v51, 0.0 }
  0xeb   :  { %345 = vmatpush.msrb.mxu1 %v292_v1 }
  0xec   :  { %205 = vmatmul.f32.vlgmr.msra.gmra.mxu2 %v133_v52  ;;  %336 = vmatmul.f32.vlgmr.msrb.gmra.mxu0 %v133_v52 }
  0xed   :  { %346 = vmatpush.msrb.mxu1 %v291_v3 }
  0xef   :  { %347 = vmatpush.msrb.mxu1 %v290_v5 }
  0xf1   :  { %348 = vmatpush.msrb.mxu1 %v289_v7 }
  0xf3   :  { %349 = vmatpush.msrb.mxu1 %v288_v9 }
  0xf5   :  { %350 = vmatpush.msrb.mxu1 %v287_v11 }
  0xf7   :  { %351 = vmatpush.msrb.mxu1 %v286_v13 }
  0xf9   :  { %352 = vmatpush.msrb.mxu1 %v285_v15 }
  0xfb   :  { %353 = vmatpush.msrb.mxu1 %v284_v18 }
  0xfd   :  { %354 = vmatpush.msrb.mxu1 %v283_v20 }
  0xff   :  { %355 = vmatpush.msrb.mxu1 %v282_v23 }
 0x139   :  { %v186_v54 = vpop.f32.mrf.mxu1 }
 0x169   :  { %v337_v46 = vpop.f32.mrf.mxu0 }
 0x16a   :  { %v338_v47 = vadd.f32 %v337_v46, %v318_v45 }
 0x16f   :  { %v206_v55 = vpop.f32.mrf.mxu2 }
 0x170   :  { %v542_v56 = vadd.f32 %v206_v55, %v186_v54 }
 0x172   :  { %v209_v57 = vrot.slane %v542_v56, 4 }
 0x174   :  { %v210_v59 = vadd.f32 %v209_v57, %v542_v56 }
 0x176   :  { %v211_v60 = vrot.slane %v210_v59, 2 }
 0x178   :  { %v212_v21 = vadd.f32 %v211_v60, %v210_v59 }
 0x17a   :  { %v213_v63 = vrot.slane %v212_v21, 1 }
 0x17c   :  { %v214_v2 = vadd.f32 %v213_v63, %v212_v21 }
 0x17e   :  { %v215_v4 = vmul.f32 0.125, %v214_v2 }
 0x180   :  { %v216_v6 = vsub.f32 %v542_v56, %v215_v4 }
 0x182   :  { %v217_v8 = vmul.f32 %v216_v6, %v216_v6 }
 0x184   :  { %v218_v10 = vrot.slane %v217_v8, 4 }
 0x186   :  { %v219_v12 = vadd.f32 %v218_v10, %v217_v8 }
 0x188   :  { %v220_v14 = vrot.slane %v219_v12, 2 }
 0x18a   :  { %v221_v17 = vadd.f32 %v220_v14, %v219_v12 }
 0x18c   :  { %v222_v19 = vrot.slane %v221_v17, 1 }
 0x18e   :  { %v223_v22 = vadd.f32 %v222_v19, %v221_v17 }
 0x190   :  { %v224_v24 = vmul.f32 0.125, %v223_v22 }
 0x192   :  { %v226_v25 = vadd.f32 1e-05, %v224_v24 }
 0x194   :  { %388 = vrsqrt.f32 %v226_v25  ;;  %vm233_vm4 = vweird.f32 %v226_v25 }
 0x19a   :  { %v389_v26 = vpop.eup %388 }
 0x19b   :  { %v228_v27 = vmul.f32 %v389_v26, %v226_v25  ;;  %vm234_vm3 = vweird.f32 %v389_v26 }
 0x19c   :  { %vm235_vm5 = vmor %vm233_vm4, %vm234_vm3 }
 0x19d   :  { %v229_v28 = vmul.f32 %v389_v26, %v228_v27 }
 0x19f   :  { %v230_v29 = vmul.f32 0.5, %v229_v28 }
 0x1a1   :  { %v231_v30 = vsub.f32 1.5, %v230_v29 }
 0x1a3   :  { %v232_v32 = vmul.f32 %v389_v26, %v231_v30 }
 0x1a5   :  { %v236_v33 = vsel %vm235_vm5, %v389_v26, %v232_v32 }
 0x1a6   :  { %v237_v34 = vmul.f32 %v236_v33, %v225_v31 }
 0x1a8   :  { %v239_v36 = vmul.f32 %v237_v34, %v215_v4  ;;  %v241_v37 = vperm.slane %v237_v34, 0 }
 0x1aa   :  { %v240_v38 = vsub.f32 %v238_v35, %v239_v36  ;;  %v242_v39 = vmul.f32 %v241_v37, %v542_v56 }
 0x1ac   :  { %v243_v40 = vperm.slane %v240_v38, 0 }
 0x1ae   :  { %v244_v41 = vadd.f32 %v243_v40, %v242_v39 }
 0x1b0   :  { %v245_v42 = vmax.f32 %v244_v41, 0.0 }
 0x1b2   :  { %356 = vmatmul.f32.vlgmr.msrb.gmra.mxu1 %v245_v42 }
 0x22f   :  { %v357_v48 = vpop.f32.mrf.mxu1 }
 0x230   :  { %v358_v49 = vadd.f32 %v357_v48, %v338_v47 }
 0x232   :  { %360 = vst [vmem:[#allocation9] sm:$0xff] %v358_v49 }
 0x233   :  { %371 = dma.vmem_to_hbm [thread:$0]  %s367_s2, 128, %s369_s30, [#allocation5]  }
 0x234   :  { %490 = dma.done.wait [#allocation5], 128  }
 0x235   :  { %491 = vsyncadd [#allocation5], 4294967168 }
 0x236   :  { %376 = vsyncpa [#allocation4], 1 }
 0x237   :  { %377 = vsyncpa [#allocation7], 1 }
 0x238   :  { %378 = vsyncpa [#allocation5], 1 }

</bundles_post_ra>
